<compile_context>
chip_gen: v7x
topology: tpu7x:2x2x1
jax: 0.10.0
libtpu: 0.0.40
codegen_flags: <defaults>
</compile_context>

<pallas_src>
import functools

import jax
import jax.numpy as jnp
import numpy as np
from jax.experimental import pallas as pl
from jax.experimental.pallas import tpu as pltpu


def _round_up(n, m):
    return ((n + m - 1) // m) * m


def _fuzzy_attention_kernel(*refs, n_rules, d_model, projection):
    if projection:
        (x_ref, wq_ref, bq_ref, mem_a_ref, mem_b_ref, mem_c_ref,
         wc_ref, bc_ref, out_ref) = refs
    else:
        (x_ref, mem_a_ref, mem_b_ref, mem_c_ref,
         wc_ref, bc_ref, out_ref) = refs

    x = x_ref[...]                                            # (TB, D) f32

    # --- antecedent input: optional linear projection (f32 MXU matmul) ---
    if projection:
        q = jnp.dot(x, wq_ref[...], preferred_element_type=jnp.float32) + bq_ref[...]
    else:
        q = x

    # --- HTSK-style memberships via expanded quadratic, on the MXU ---
    # z_r = (-0.5/D) * ( q^2 @ inv_w2_r - 2 q @ (c*inv_w2)_r + sum_d c^2*inv_w2 )
    z = (jnp.dot(q * q, mem_a_ref[...], preferred_element_type=jnp.float32)
         + jnp.dot(q, mem_b_ref[...], preferred_element_type=jnp.float32)
         + mem_c_ref[...])                                    # (TB, R)
    z = z * (-0.5 / d_model)

    # --- softmax over rules -> firing strengths ---
    z = z - jnp.max(z, axis=-1, keepdims=True)
    e = jnp.exp(z)
    fs = e * pl.reciprocal(jnp.sum(e, axis=-1, keepdims=True), approx=False)  # (TB, R)

    # --- order-1 consequents: one bf16 MXU matmul over all rules, f32 accumulation ---
    cq = jnp.dot(x.astype(jnp.bfloat16), wc_ref[...],
                 preferred_element_type=jnp.float32) + bc_ref[...]   # (TB, R*D)

    # --- defuzzification, lane-dense: out[:, d] = sum_r fs[:, r] * cq[:, r*D + d] ---
    acc = fs[:, 0:1] * cq[:, 0:d_model]
    for r in range(1, n_rules):
        acc = acc + fs[:, r:r + 1] * cq[:, r * d_model:(r + 1) * d_model]
    out_ref[...] = acc.astype(out_ref.dtype)


def fuzzy_attention_forward(x, params, *, n_rules, projection=True, block_tokens=512):
    """x: (B, S, L, D) float. params: torch-layout weights (see init_params)."""
    B, S, L, D = x.shape
    R = n_rules
    N = B * S * L

    x2d = x.astype(jnp.float32).reshape(N, D)

    # ---- precompute membership operands (one-time, outside the kernel) ----
    centers = params["centers"].astype(jnp.float32)           # (R, D)
    widths = params["widths"].astype(jnp.float32)             # (R, D)
    inv_w2 = 1.0 / (widths * widths)
    mem_a = inv_w2.T                                          # (D, R)
    mem_b = (-2.0 * centers * inv_w2).T                       # (D, R)
    mem_c = jnp.sum(centers * centers * inv_w2, axis=-1)[None, :]   # (1, R)

    # ---- consequent weights: torch Linear(D, R*D) layout, row j = d*R + r ----
    # repack columns as r*D + d so each rule's consequent is a contiguous lane slab
    wc = params["wc"].astype(jnp.float32)                     # (R*D, D)
    bc = params["bc"].astype(jnp.float32)                     # (R*D,)
    wc_lane = wc.reshape(D, R, D).transpose(1, 0, 2).reshape(R * D, D).T   # (D, R*D)
    bc_lane = bc.reshape(D, R).T.reshape(1, R * D)            # (1, R*D)
    wc_lane = wc_lane.astype(jnp.bfloat16)                    # bf16 operand, f32 accumulate

    # ---- token tiling (grid over the flattened (b s c) axis) ----
    tb = _round_up(min(block_tokens, _round_up(N, 8)), 8)
    n_pad = _round_up(N, tb)
    if n_pad != N:
        x2d = jnp.pad(x2d, ((0, n_pad - N), (0, 0)))

    const = lambda i: (0, 0)                                  # weights: VMEM-resident
    in_specs = [pl.BlockSpec((tb, D), lambda i: (i, 0))]
    args = [x2d]
    if projection:
        wq_t = params["wq"].astype(jnp.float32).T             # (D, D): q = x @ wq_t + bq
        bq = params["bq"].astype(jnp.float32)[None, :]        # (1, D)
        in_specs += [pl.BlockSpec((D, D), const), pl.BlockSpec((1, D), const)]
        args += [wq_t, bq]
    in_specs += [pl.BlockSpec((D, R), const),
                 pl.BlockSpec((D, R), const),
                 pl.BlockSpec((1, R), const),
                 pl.BlockSpec((D, R * D), const),
                 pl.BlockSpec((1, R * D), const)]
    args += [mem_a, mem_b, mem_c, wc_lane, bc_lane]

    kernel = functools.partial(_fuzzy_attention_kernel, n_rules=R, d_model=D,
                               projection=projection)
    out = pl.pallas_call(
        kernel,
        out_shape=jax.ShapeDtypeStruct((n_pad, D), jnp.float32),
        grid=(n_pad // tb,),
        in_specs=in_specs,
        out_specs=pl.BlockSpec((tb, D), lambda i: (i, 0)),
        compiler_params=pltpu.CompilerParams(
            dimension_semantics=("parallel",)),
    )(*args)
    return out[:N].reshape(B, S, L, D)


def init_params(key, n_rules, d_model, projection=True):
    """Deterministic synthetic parameters in PyTorch layout."""
    kc, kw, kwc, kbc, kwq, kbq = jax.random.split(key, 6)
    centers = jax.random.uniform(kc, (n_rules, d_model), jnp.float32)        # torch.rand
    # torch.rand as well, but kept away from 0 so the width division is well conditioned
    widths = jax.random.uniform(kw, (n_rules, d_model), jnp.float32,
                                minval=0.5, maxval=1.0)
    bound = 1.0 / float(np.sqrt(d_model))                                    # nn.Linear default
    wc = jax.random.uniform(kwc, (n_rules * d_model, d_model), jnp.float32, -bound, bound)
    bc = jax.random.uniform(kbc, (n_rules * d_model,), jnp.float32, -bound, bound)
    params = {"centers": centers, "widths": widths, "wc": wc, "bc": bc,
              "wq": None, "bq": None}
    if projection:
        params["wq"] = jax.random.uniform(kwq, (d_model, d_model), jnp.float32, -bound, bound)
        params["bq"] = jax.random.uniform(kbq, (d_model,), jnp.float32, -bound, bound)
    return params


def fuzzy_attention_reference(x, params, *, n_rules, projection=True):
    """Pure-JAX f32 transcription of the PyTorch forward."""
    B, S, L, D = x.shape
    R = n_rules
    hp = jax.lax.Precision.HIGHEST
    xf = x.astype(jnp.float32).reshape(B * S * L, D)
    if projection:
        q = jnp.dot(xf, params["wq"].T, precision=hp) + params["bq"]
    else:
        q = xf
    qr = q.reshape(B * S, L, D)
    dist = jnp.abs(qr[:, :, None, :] - params["centers"][None, None, :, :])
    prot = dist / params["widths"][None, None, :, :]
    z = jnp.mean(-0.5 * jnp.square(prot), axis=-1)            # (B*S, L, R)
    fss = jax.nn.softmax(z, axis=-1)
    conq = jnp.dot(xf, params["wc"].T, precision=hp) + params["bc"]   # (N, R*D)
    conq_r = conq.reshape(B * S * L, D, R)                    # col j = d*R + r
    fss_f = fss.reshape(B * S * L, R)
    out = jnp.einsum("nr,ndr->nd", fss_f, conq_r, precision=hp)
    return out.reshape(B, S, L, D)


if __name__ == "__main__":
    key = jax.random.PRNGKey(0)
    B, S, L, D = 2, 4, 8, 32        # input_shape = (B, S, L, D); n_rules defaults to L
    n_rules = L

    k_x, k_p = jax.random.split(key)
    x = jax.random.normal(k_x, (B, S, L, D), jnp.float32)
    params = init_params(k_p, n_rules, D, projection=True)

    out = fuzzy_attention_forward(x, params, n_rules=n_rules, projection=True,
                                  block_tokens=32)            # grid of 2 token tiles
    out = jax.block_until_ready(out)

    ref = fuzzy_attention_reference(x, params, n_rules=n_rules, projection=True)
    # bf16 consequent matmul (f32 accumulation) -> allow small drift vs the f32 reference
    np.testing.assert_allclose(np.asarray(out), np.asarray(ref), rtol=2e-2, atol=1e-2)

    print("KERNEL_OK")
</pallas_src>

<mosaic_0001>
module attributes {stable_mosaic.version = 11 : i64} {
  func.func @_fuzzy_attention_kernel(%arg0: i32, %arg1: memref<32x32xf32, #tpu.memory_space<vmem>>, %arg2: memref<32x32xf32, #tpu.memory_space<vmem>>, %arg3: memref<1x32xf32, #tpu.memory_space<vmem>>, %arg4: memref<32x8xf32, #tpu.memory_space<vmem>>, %arg5: memref<32x8xf32, #tpu.memory_space<vmem>>, %arg6: memref<1x8xf32, #tpu.memory_space<vmem>>, %arg7: memref<32x256xbf16, #tpu.memory_space<vmem>>, %arg8: memref<1x256xf32, #tpu.memory_space<vmem>>, %arg9: memref<32x32xf32, #tpu.memory_space<vmem>>) attributes {dimension_semantics = [#tpu.dimension_semantics<parallel>], iteration_bounds = array<i64: 2>, scalar_prefetch = 0 : i64, scratch_operands = 0 : i64, tpu.core_type = #tpu.core_type<tc>, window_params = [{transform_indices = @transform_0, window_bounds = array<i64: 32, 32>}, {pipeline_mode = #tpu.pipeline_mode<synchronous>, transform_indices = @transform_1, window_bounds = array<i64: 32, 32>}, {pipeline_mode = #tpu.pipeline_mode<synchronous>, transform_indices = @transform_2, window_bounds = array<i64: 1, 32>}, {pipeline_mode = #tpu.pipeline_mode<synchronous>, transform_indices = @transform_3, window_bounds = array<i64: 32, 8>}, {pipeline_mode = #tpu.pipeline_mode<synchronous>, transform_indices = @transform_4, window_bounds = array<i64: 32, 8>}, {pipeline_mode = #tpu.pipeline_mode<synchronous>, transform_indices = @transform_5, window_bounds = array<i64: 1, 8>}, {pipeline_mode = #tpu.pipeline_mode<synchronous>, transform_indices = @transform_6, window_bounds = array<i64: 32, 256>}, {pipeline_mode = #tpu.pipeline_mode<synchronous>, transform_indices = @transform_7, window_bounds = array<i64: 1, 256>}, {transform_indices = @transform_8, window_bounds = array<i64: 32, 32>}]} {
    %c0 = arith.constant 0 : index
    %c0_0 = arith.constant 0 : index
    %0 = vector.load %arg1[%c0, %c0_0] : memref<32x32xf32, #tpu.memory_space<vmem>>, vector<32x32xf32>
    %c0_1 = arith.constant 0 : index
    %c0_2 = arith.constant 0 : index
    %1 = vector.load %arg2[%c0_1, %c0_2] : memref<32x32xf32, #tpu.memory_space<vmem>>, vector<32x32xf32>
    %cst = arith.constant dense<0.000000e+00> : vector<32x32xf32>
    %2 = tpu.matmul %0, %1, %cst {dimension_numbers = #tpu.dot_dimension_numbers<[1], [0], [0], [1], [0, 0, 1, 1], [], []>} : vector<32x32xf32>, vector<32x32xf32>, vector<32x32xf32> -> vector<32x32xf32>
    %c0_3 = arith.constant 0 : index
    %c0_4 = arith.constant 0 : index
    %3 = vector.load %arg3[%c0_3, %c0_4] : memref<1x32xf32, #tpu.memory_space<vmem>>, vector<1x32xf32>
    %4 = vector.broadcast %3 : vector<1x32xf32> to vector<32x32xf32>
    %5 = arith.addf %2, %4 : vector<32x32xf32>
    %6 = arith.mulf %5, %5 : vector<32x32xf32>
    %c0_5 = arith.constant 0 : index
    %c0_6 = arith.constant 0 : index
    %7 = vector.load %arg4[%c0_5, %c0_6] : memref<32x8xf32, #tpu.memory_space<vmem>>, vector<32x8xf32>
    %cst_7 = arith.constant dense<0.000000e+00> : vector<32x8xf32>
    %8 = tpu.matmul %6, %7, %cst_7 {dimension_numbers = #tpu.dot_dimension_numbers<[1], [0], [0], [1], [0, 0, 1, 1], [], []>} : vector<32x32xf32>, vector<32x8xf32>, vector<32x8xf32> -> vector<32x8xf32>
    %c0_8 = arith.constant 0 : index
    %c0_9 = arith.constant 0 : index
    %9 = vector.load %arg5[%c0_8, %c0_9] : memref<32x8xf32, #tpu.memory_space<vmem>>, vector<32x8xf32>
    %cst_10 = arith.constant dense<0.000000e+00> : vector<32x8xf32>
    %10 = tpu.matmul %5, %9, %cst_10 {dimension_numbers = #tpu.dot_dimension_numbers<[1], [0], [0], [1], [0, 0, 1, 1], [], []>} : vector<32x32xf32>, vector<32x8xf32>, vector<32x8xf32> -> vector<32x8xf32>
    %11 = arith.addf %8, %10 : vector<32x8xf32>
    %c0_11 = arith.constant 0 : index
    %c0_12 = arith.constant 0 : index
    %12 = vector.load %arg6[%c0_11, %c0_12] : memref<1x8xf32, #tpu.memory_space<vmem>>, vector<1x8xf32>
    %13 = vector.broadcast %12 : vector<1x8xf32> to vector<32x8xf32>
    %14 = arith.addf %11, %13 : vector<32x8xf32>
    %cst_13 = arith.constant -1.562500e-02 : f32
    %15 = vector.broadcast %cst_13 : f32 to vector<32x8xf32>
    %16 = arith.mulf %14, %15 : vector<32x8xf32>
    %cst_14 = arith.constant dense<0xFF800000> : vector<32xf32>
    %17 = vector.multi_reduction <maximumf>, %16, %cst_14 [1] : vector<32x8xf32> to vector<32xf32>
    %18 = vector.shape_cast %17 : vector<32xf32> to vector<32x1xf32>
    %19 = vector.broadcast %18 : vector<32x1xf32> to vector<32x8xf32>
    %20 = arith.subf %16, %19 : vector<32x8xf32>
    %21 = math.exp %20 : vector<32x8xf32>
    %cst_15 = arith.constant dense<0.000000e+00> : vector<32xf32>
    %22 = vector.multi_reduction <add>, %21, %cst_15 [1] : vector<32x8xf32> to vector<32xf32>
    %23 = vector.shape_cast %22 : vector<32xf32> to vector<32x1xf32>
    %24 = tpu.reciprocal %23 : vector<32x1xf32> -> vector<32x1xf32>
    %25 = vector.broadcast %24 : vector<32x1xf32> to vector<32x8xf32>
    %26 = arith.mulf %21, %25 : vector<32x8xf32>
    %27 = arith.truncf %0 : vector<32x32xf32> to vector<32x32xbf16>
    %c0_16 = arith.constant 0 : index
    %c0_17 = arith.constant 0 : index
    %28 = vector.load %arg7[%c0_16, %c0_17] : memref<32x256xbf16, #tpu.memory_space<vmem>>, vector<32x256xbf16>
    %cst_18 = arith.constant dense<0.000000e+00> : vector<32x256xf32>
    %29 = tpu.matmul %27, %28, %cst_18 {dimension_numbers = #tpu.dot_dimension_numbers<[1], [0], [0], [1], [0, 0, 1, 1], [], []>} : vector<32x32xbf16>, vector<32x256xbf16>, vector<32x256xf32> -> vector<32x256xf32>
    %c0_19 = arith.constant 0 : index
    %c0_20 = arith.constant 0 : index
    %30 = vector.load %arg8[%c0_19, %c0_20] : memref<1x256xf32, #tpu.memory_space<vmem>>, vector<1x256xf32>
    %31 = vector.broadcast %30 : vector<1x256xf32> to vector<32x256xf32>
    %32 = arith.addf %29, %31 : vector<32x256xf32>
    %33 = vector.extract_strided_slice %26 {offsets = [0, 0], sizes = [32, 1], strides = [1, 1]} : vector<32x8xf32> to vector<32x1xf32>
    %34 = vector.extract_strided_slice %32 {offsets = [0, 0], sizes = [32, 32], strides = [1, 1]} : vector<32x256xf32> to vector<32x32xf32>
    %35 = vector.broadcast %33 : vector<32x1xf32> to vector<32x32xf32>
    %36 = arith.mulf %35, %34 : vector<32x32xf32>
    %37 = vector.extract_strided_slice %26 {offsets = [0, 1], sizes = [32, 1], strides = [1, 1]} : vector<32x8xf32> to vector<32x1xf32>
    %38 = vector.extract_strided_slice %32 {offsets = [0, 32], sizes = [32, 32], strides = [1, 1]} : vector<32x256xf32> to vector<32x32xf32>
    %39 = vector.broadcast %37 : vector<32x1xf32> to vector<32x32xf32>
    %40 = arith.mulf %39, %38 : vector<32x32xf32>
    %41 = arith.addf %36, %40 : vector<32x32xf32>
    %42 = vector.extract_strided_slice %26 {offsets = [0, 2], sizes = [32, 1], strides = [1, 1]} : vector<32x8xf32> to vector<32x1xf32>
    %43 = vector.extract_strided_slice %32 {offsets = [0, 64], sizes = [32, 32], strides = [1, 1]} : vector<32x256xf32> to vector<32x32xf32>
    %44 = vector.broadcast %42 : vector<32x1xf32> to vector<32x32xf32>
    %45 = arith.mulf %44, %43 : vector<32x32xf32>
    %46 = arith.addf %41, %45 : vector<32x32xf32>
    %47 = vector.extract_strided_slice %26 {offsets = [0, 3], sizes = [32, 1], strides = [1, 1]} : vector<32x8xf32> to vector<32x1xf32>
    %48 = vector.extract_strided_slice %32 {offsets = [0, 96], sizes = [32, 32], strides = [1, 1]} : vector<32x256xf32> to vector<32x32xf32>
    %49 = vector.broadcast %47 : vector<32x1xf32> to vector<32x32xf32>
    %50 = arith.mulf %49, %48 : vector<32x32xf32>
    %51 = arith.addf %46, %50 : vector<32x32xf32>
    %52 = vector.extract_strided_slice %26 {offsets = [0, 4], sizes = [32, 1], strides = [1, 1]} : vector<32x8xf32> to vector<32x1xf32>
    %53 = vector.extract_strided_slice %32 {offsets = [0, 128], sizes = [32, 32], strides = [1, 1]} : vector<32x256xf32> to vector<32x32xf32>
    %54 = vector.broadcast %52 : vector<32x1xf32> to vector<32x32xf32>
    %55 = arith.mulf %54, %53 : vector<32x32xf32>
    %56 = arith.addf %51, %55 : vector<32x32xf32>
    %57 = vector.extract_strided_slice %26 {offsets = [0, 5], sizes = [32, 1], strides = [1, 1]} : vector<32x8xf32> to vector<32x1xf32>
    %58 = vector.extract_strided_slice %32 {offsets = [0, 160], sizes = [32, 32], strides = [1, 1]} : vector<32x256xf32> to vector<32x32xf32>
    %59 = vector.broadcast %57 : vector<32x1xf32> to vector<32x32xf32>
    %60 = arith.mulf %59, %58 : vector<32x32xf32>
    %61 = arith.addf %56, %60 : vector<32x32xf32>
    %62 = vector.extract_strided_slice %26 {offsets = [0, 6], sizes = [32, 1], strides = [1, 1]} : vector<32x8xf32> to vector<32x1xf32>
    %63 = vector.extract_strided_slice %32 {offsets = [0, 192], sizes = [32, 32], strides = [1, 1]} : vector<32x256xf32> to vector<32x32xf32>
    %64 = vector.broadcast %62 : vector<32x1xf32> to vector<32x32xf32>
    %65 = arith.mulf %64, %63 : vector<32x32xf32>
    %66 = arith.addf %61, %65 : vector<32x32xf32>
    %67 = vector.extract_strided_slice %26 {offsets = [0, 7], sizes = [32, 1], strides = [1, 1]} : vector<32x8xf32> to vector<32x1xf32>
    %68 = vector.extract_strided_slice %32 {offsets = [0, 224], sizes = [32, 32], strides = [1, 1]} : vector<32x256xf32> to vector<32x32xf32>
    %69 = vector.broadcast %67 : vector<32x1xf32> to vector<32x32xf32>
    %70 = arith.mulf %69, %68 : vector<32x32xf32>
    %71 = arith.addf %66, %70 : vector<32x32xf32>
    %c0_21 = arith.constant 0 : index
    %c0_22 = arith.constant 0 : index
    %72 = vector.load %arg9[%c0_21, %c0_22] : memref<32x32xf32, #tpu.memory_space<vmem>>, vector<32x32xf32>
    tpu.vector_store %arg9[%c0_21, %c0_22], %71 {strides = array<i32>} : memref<32x32xf32, #tpu.memory_space<vmem>>, vector<32x32xf32>,
    return
  }
  func.func @transform_0(%arg0: i32) -> (i32, i32) {
    %c0_i32 = arith.constant 0 : i32
    %c0_i32_0 = arith.constant 0 : i32
    return %arg0, %c0_i32 : i32, i32
  }
  func.func @transform_1(%arg0: i32) -> (i32, i32) {
    %c0_i32 = arith.constant 0 : i32
    %c0_i32_0 = arith.constant 0 : i32
    %c0_i32_1 = arith.constant 0 : i32
    return %c0_i32, %c0_i32_0 : i32, i32
  }
  func.func @transform_2(%arg0: i32) -> (i32, i32) {
    %c0_i32 = arith.constant 0 : i32
    %c0_i32_0 = arith.constant 0 : i32
    %c0_i32_1 = arith.constant 0 : i32
    return %c0_i32, %c0_i32_0 : i32, i32
  }
  func.func @transform_3(%arg0: i32) -> (i32, i32) {
    %c0_i32 = arith.constant 0 : i32
    %c0_i32_0 = arith.constant 0 : i32
    %c0_i32_1 = arith.constant 0 : i32
    return %c0_i32, %c0_i32_0 : i32, i32
  }
  func.func @transform_4(%arg0: i32) -> (i32, i32) {
    %c0_i32 = arith.constant 0 : i32
    %c0_i32_0 = arith.constant 0 : i32
    %c0_i32_1 = arith.constant 0 : i32
    return %c0_i32, %c0_i32_0 : i32, i32
  }
  func.func @transform_5(%arg0: i32) -> (i32, i32) {
    %c0_i32 = arith.constant 0 : i32
    %c0_i32_0 = arith.constant 0 : i32
    %c0_i32_1 = arith.constant 0 : i32
    return %c0_i32, %c0_i32_0 : i32, i32
  }
  func.func @transform_6(%arg0: i32) -> (i32, i32) {
    %c0_i32 = arith.constant 0 : i32
    %c0_i32_0 = arith.constant 0 : i32
    %c0_i32_1 = arith.constant 0 : i32
    return %c0_i32, %c0_i32_0 : i32, i32
  }
  func.func @transform_7(%arg0: i32) -> (i32, i32) {
    %c0_i32 = arith.constant 0 : i32
    %c0_i32_0 = arith.constant 0 : i32
    %c0_i32_1 = arith.constant 0 : i32
    return %c0_i32, %c0_i32_0 : i32, i32
  }
  func.func @transform_8(%arg0: i32) -> (i32, i32) {
    %c0_i32 = arith.constant 0 : i32
    %c0_i32_0 = arith.constant 0 : i32
    return %arg0, %c0_i32 : i32, i32
  }
}

</mosaic_0001>

<bundles_post_ra>
// kernel: tpu_custom_call.1
= control target key start
LH: loop header
LB: loop body
LE: loop exit
PB: predicated region body
PF: predicated region fallthrough
CT: control target
= control target key end

     0   :  { %s1394_s27 = smov 0   ;;  %s1657_s0 = inlined_call_operand.vmem [shape: f32[64,32], index: 0, kind: input, shape index: {}]   ;;  %s1658_s1 = inlined_call_operand.vmem [shape: f32[32,32], index: 1, kind: input, shape index: {}]   ;;  %s1659_s2 = inlined_call_operand.vmem [shape: f32[1,32], index: 2, kind: input, shape index: {}]   ;;  %s1660_s3 = inlined_call_operand.vmem [shape: f32[32,8], index: 3, kind: input, shape index: {}]   ;;  %s1661_s4 = inlined_call_operand.vmem [shape: f32[32,8], index: 4, kind: input, shape index: {}]   ;;  %s1662_s5 = inlined_call_operand.vmem [shape: f32[1,8], index: 5, kind: input, shape index: {}]   ;;  %s1663_s6 = inlined_call_operand.vmem [shape: bf16[32,256], index: 6, kind: input, shape index: {}]   ;;  %s1664_s7 = inlined_call_operand.vmem [shape: f32[1,256], index: 7, kind: input, shape index: {}]   ;;  %s1665_s8 = inlined_call_operand.vmem [shape: f32[64,32], index: 8, kind: output, shape index: {}]  }
   0x1 LB: > { %s1134_s28 = sadd.s32 4294967295, %s1336_s27   ;;  %p1138_p0 = scmp.ge.s32.totalorder %s1336_s27, 1  ;;  %s1336_s27 = sphi %s1394_s27, %s18_s27  }
   0x2   : > { %p263_p1 = scmp.lt.s32.totalorder %s1336_s27, 3 }
   0x4   : > { %p264_p2 = pnand %p1138_p0, %p263_p1 }
   0x5   : > { %v314_v0 = vld [vmem:[%s1658_s1] sm:$0xff] (!%p264_p2)  ;;  %v315_v1 = vld [vmem:[%s1658_s1 + $0x8] sm:$0xff] (!%p264_p2)  ;;  %v316_v2 = vld [vmem:[%s1658_s1 + $0x10] sm:$0xff] (!%p264_p2)  ;;  %s1139_s13 = sshll.u32 (!%p264_p2), %s1134_s28, 2  ;;  %vm325_vm0 = vcmask (!%p264_p2), 261120   ;;  %vm644_vm1 = vcmask (!%p264_p2), 64512  }
   0x6   : > { %267 = sbr.rel (%p264_p2) target bundleno = 1121 (0x461), region = 52  ;;  %v1231_v3 = vpack.c.bf16 (!%p264_p2), %v315_v1, %v314_v0  ;;  %v317_v4 = vld [vmem:[%s1658_s1 + $0x18] sm:$0xff] (!%p264_p2)  ;;  %p298_p3 = scmp.lt.s32.totalorder (!%p264_p2), %s1139_s13, 7  ;;  %v431_v5 = vld [vmem:[%s1661_s4] sm:$0xff] (!%p264_p2)  ;;  %v432_v6 = vld [vmem:[%s1661_s4 + $0x8] sm:$0xff] (!%p264_p2)  ;;  %v1338_v57 = vmov (!%p264_p2), 0  }
   0x7   : > { %v1235_v7 = vpack.c.bf16 (!%p264_p2), %v317_v4, %v316_v2  ;;  %v1239_v8 = vpack.c.bf16 (!%p264_p2), %v432_v6, %v431_v5  ;;  %v433_v15 = vld [vmem:[%s1661_s4 + $0x10] sm:$0xff] (!%p264_p2)  ;;  %v434_v16 = vld [vmem:[%s1661_s4 + $0x18] sm:$0xff] (!%p264_p2)  ;;  %v427_v18 = vld [vmem:[%s1660_s3] sm:$0xff] (!%p264_p2)  ;;  %1278 = vset.pattern.permute.xlu1 (!%p264_p2), %v1338_v57  ;;  %s1346_s10 = smov (!%p264_p2), 96   ;;  %s1347_s11 = smov (!%p264_p2), 64  }
   0x8   : > { %1232 = vmatprep.subr.bf16.mxu0 (!%p264_p2), %v1231_v3  ;;  %v1243_v17 = vpack.c.bf16 (!%p264_p2), %v434_v16, %v433_v15  ;;  %v428_v19 = vld [vmem:[%s1660_s3 + $0x8] sm:$0xff] (!%p264_p2)  ;;  %v1143_v21 = vld [vmem:[%s1659_s2] ss:$0 sm:$0xff] (!%p264_p2)  ;;  %v429_v23 = vld [vmem:[%s1660_s3 + $0x10] sm:$0xff] (!%p264_p2)  ;;  %v1339_v15 = vmov (!%p264_p2), 2   ;;  %s1348_s12 = smov (!%p264_p2), 32  }
   0x9   : > { %1234 = vmatpush3.bf16.msra.mxu0 (!%p264_p2), %v1231_v3  ;;  %1240 = vmatprep.subr.bf16.mxu1 (!%p264_p2), %v1239_v8  ;;  %v1247_v20 = vpack.c.bf16 (!%p264_p2), %v428_v19, %v427_v18  ;;  %v430_v24 = vld [vmem:[%s1660_s3 + $0x18] sm:$0xff] (!%p264_p2)  ;;  %v1156_v37 = vld [vmem:[%s1662_s5] ss:$0 sm:$0xff] (!%p264_p2)  ;;  %v1310_v55 = vld [vmem:[%s1663_s6 + $0x4] ss:$8 sps:$4 sm:$0xff] (!%p264_p2)  }
   0xa   : > { %1236 = vmatprep.subr.bf16.mxu0 (!%p264_p2), %v1235_v7  ;;  %1242 = vmatpush3.bf16.msra.mxu1 (!%p264_p2), %v1239_v8  ;;  %v1251_v28 = vpack.c.bf16 (!%p264_p2), %v430_v24, %v429_v23  ;;  %v1308_v54 = vld [vmem:[%s1663_s6] ss:$8 sps:$4 sm:$0xff] (!%p264_p2)   ;;  %v1313_v56 = vld [vmem:[%s1663_s6 + $0x14] ss:$8 sps:$4 sm:$0xff] (!%p264_p2)   ;;  %v1311_v58 = vld [vmem:[%s1663_s6 + $0x10] ss:$8 sps:$4 sm:$0xff] (!%p264_p2)   ;;  %v697_v23 = vlaneseq (!%p264_p2) }
   0xb   : > { %1244 = vmatprep.subr.bf16.mxu1 (!%p264_p2), %v1243_v17  ;;  %1280 = vset.pattern.permute.xlu0 (!%p264_p2), %v1339_v15 }
   0xd   : > { %s1667_s13 = smov (!%p298_p3, %s1139_s13), 7  ;;  %1238 = vmatpush3.bf16.msra.mxu0 %v1235_v7 }
   0xe   : > { %s1140_s20 = sshll.u32 %s1667_s13, 3  ;;  %1246 = vmatpush3.bf16.msra.mxu1 %v1243_v17  ;;  %733 = vmatprep.subr.bf16.mxu0 %v1310_v55 }
   0xf   : > { %s301_s23 = scalar_lea.vmem %s1657_s0, %s1140_s20  ;;  %1248 = vmatprep.subr.bf16.mxu1 %v1247_v20  ;;  %s1638_s16 = scalar_lea.vmem %s1665_s8, %s1140_s20 }
  0x10   : > { %v1428_v9 = vld [vmem:[%s301_s23] sm:$0xff]  ;;  %v1430_v10 = vld [vmem:[%s301_s23 + $0x8] sm:$0xff]  ;;  %v1436_v12 = vld [vmem:[%s301_s23 + $0x10] sm:$0xff] }
  0x11   : > { %1197 = vmatprep.mubr.msk.f32.mxu0 %vm325_vm0, %v1428_v9  ;;  %v689_v11 = vpack.c.bf16 %v1430_v10, %v1428_v9  ;;  %v1438_v13 = vld [vmem:[%s301_s23 + $0x18] sm:$0xff] }
  0x12   : > { %v690_v14 = vpack.c.bf16 %v1438_v13, %v1436_v12  ;;  %1198 = vmatmul.mubr.msk.f32.vlgmr.msra.gmra.mrb[0].mxu0 %vm325_vm0, %v1430_v10 }
  0x13   : > { %1200 = vmatprep.mubr.msk.f32.mxu0 %vm325_vm0, %v1436_v12  ;;  %734 = vmatpush1.bf16.msra.mxu0 %v1308_v54 }
  0x14   : > { %735 = vmatprep.subr.bf16.mxu0 %v1313_v56 }
  0x16   : > { %1201 = vmatmul.mubr.msk.f32.gmra.mrb[2].mxu0 %vm325_vm0, %v1438_v13 }
  0x17   : > { %765 = vmatprep.mubr.bf16.mxu0 %v1338_v57  ;;  %736 = vmatpush1.bf16.msra.mxu0 %v1311_v58 }
  0x1a   : > { %1161 = vmatmul.mubr.msk.bf16.vlgmr.msra.gmra.mrb[4].mxu0 %vm325_vm0, %v689_v11 }
  0x1b   : > { %775 = vmatprep.mubr.bf16.mxu0 %v1338_v57 }
  0x22   : > { %1162 = vmatmul.mubr.msk.bf16.gmra.mrb[8].mxu0 %vm325_vm0, %v690_v14 }
  0xe5   : > { %v1199_v22 = vpop.f32.mrb[0].mxu0 }
  0xe6   : > { %v404_v25 = vpop.f32.mrb[1].mxu0  ;;  %v410_v27 = vadd.f32 %v1199_v22, %v1143_v21 }
  0xe7   : > { %v405_v26 = vadd.f32 %v1143_v21, %v404_v25 }
  0xe8   : > { %v424_v34 = vmul.f32 %v410_v27, %v410_v27 }
  0xe9   : > { %v1202_v29 = vpop.f32.mrb[2].mxu0  ;;  %1211 = vmatprep.mubr.msk.f32.mxu1 %vm325_vm0, %v405_v26  ;;  %v423_v33 = vmul.f32 %v405_v26, %v405_v26  ;;  %v698_v26 = vshrl.u32 %v697_v23, 7 }
  0xea   : > { %v414_v30 = vpop.f32.mrb[3].mxu0  ;;  %1212 = vmatmul.mubr.msk.f32.vlgmr.msra.gmra.mrb[0].mxu1 %vm325_vm0, %v410_v27  ;;  %v420_v32 = vadd.f32 %v1202_v29, %v1143_v21  ;;  %v1340_v27 = vmov 5  }
  0xeb   : > { %v415_v31 = vadd.f32 %v1143_v21, %v414_v30  ;;  %1250 = vmatpush3.bf16.msra.mxu1 %v1247_v20  ;;  %v699_v30 = vsub.s32 0, %v698_v26 }
  0xec   : > { %1252 = vmatprep.subr.bf16.mxu1 %v1251_v28  ;;  %v426_v36 = vmul.f32 %v420_v32, %v420_v32 }
  0xed   : > { %1214 = vmatprep.mubr.msk.f32.mxu1 %vm325_vm0, %v415_v31  ;;  %v425_v35 = vmul.f32 %v415_v31, %v415_v31  ;;  %v1515_v16 = vpop.f32.mrb[4].mxu0  ;;  %v695_v31 = vld [vmem:[%s1664_s7] sm:$0x3] }
  0xee   : > { %1215 = vmatmul.mubr.msk.f32.gmra.mrb[2].mxu1 %vm325_vm0, %v420_v32  ;;  %v1517_v17 = vpop.f32.mrb[5].mxu0  ;;  %v703_v32 = vsub.s32 1, %v698_v26 }
  0xef   : > { %1254 = vmatpush3.bf16.msra.mxu1 %v1251_v28  ;;  %1225 = vmatprep.mubr.msk.f32.mxu1 %vm325_vm0, %v423_v33  ;;  %v1519_v18 = vpop.f32.mrb[6].mxu0  ;;  %v1341_v28 = vmov 1  }
  0xf0   : > { %v1525_v25 = vpop.f32.mrb[7].mxu0 }
  0xf2   : > { %1226 = vmatmul.mubr.msk.f32.vlgmr.msra.gmra.mrb[0].mxu1 %vm325_vm0, %v424_v34 }
  0xf3   : > { %1228 = vmatprep.mubr.msk.f32.mxu1 %vm325_vm0, %v425_v35  ;;  %v1342_v35 = vmov 3  }
  0xf6   : > { %1229 = vmatmul.mubr.msk.f32.gmra.mrb[2].mxu1 %vm325_vm0, %v426_v36  ;;  %v1535_v36 = vrot.slane %v695_v31, %v699_v30 }
  0xf8   : > { %v768_v58 = vadd.f32 %v1515_v16, %v1535_v36 }
 0x1c5   : > { %v1227_v38 = vpop.f32.mrb[0].mxu1 }
 0x1c6   : > { %v610_v39 = vpop.f32.mrb[1].mxu1  ;;  %v637_v40 = vadd.f32 %v1227_v38, %v1156_v37  ;;  %v1538_v38 = vrot.slane %v695_v31, %v703_v32 }
 0x1c7   : > { %v636_v41 = vadd.f32 %v1156_v37, %v610_v39  ;;  %v777_v39 = vpop.f32.mrb[8].mxu0 }
 0x1c8   : > { %v641_v45 = vmul.f32 -0.015625, %v637_v40  ;;  %v1541_v40 = vadd.f32 %v777_v39, %v1535_v36 }
 0x1c9   : > { %v640_v42 = vmul.f32 -0.015625, %v636_v41  ;;  %v1230_v43 = vpop.f32.mrb[2].mxu1  ;;  %v779_v41 = vpop.f32.mrb[9].mxu0 }
 0x1ca   : > { %v620_v44 = vpop.f32.mrb[3].mxu1  ;;  %v639_v46 = vadd.f32 %v1230_v43, %v1156_v37  ;;  %v648_v51 = vsel %vm644_vm1, %v641_v45, -inf  ;;  %v1546_v43 = vpop.f32.mrb[10].mxu0 }
 0x1cb   : > { %v638_v47 = vadd.f32 %v1156_v37, %v620_v44  ;;  %v645_v48 = vsel %vm644_vm1, %v640_v42, -inf }
 0x1cc   : > { %646 = vmax.xlane.f32.xlu0 %v645_v48  ;;  %v643_v50 = vmul.f32 -0.015625, %v639_v46  ;;  %v1550_v46 = vpop.f32.mrb[11].mxu0 }
 0x1cd   : > { %v642_v49 = vmul.f32 -0.015625, %v638_v47 }
 0x1ce   : > { %v654_v53 = vsel %vm644_vm1, %v643_v50, -inf }
 0x1cf   : > { %v651_v52 = vsel %vm644_vm1, %v642_v49, -inf }
 0x1d0   : > { %649 = vmax.xlane.f32.xlu0 %v648_v51  ;;  %652 = vmax.xlane.f32.xlu1 %v651_v52  ;;  %v772_v51 = vadd.f32 %v1519_v18, %v1535_v36 }
 0x1d4   : > { %655 = vmax.xlane.f32.xlu1 %v654_v53 }
 0x259   : > { %v647_v59 = vpop.xlane.xlu0 %646 }
 0x25a   : > { %v657_v60 = vsub.f32 %v640_v42, %v647_v59  ;;  %v1544_v42 = vadd.f32 %v779_v41, %v1538_v38 }
 0x25c   : > { %v661_v61 = vmul.f32 1.442695, %v657_v60 }
 0x25d   : > { %v650_v62 = vpop.xlane.xlu0 %649  ;;  %v653_v63 = vpop.xlane.xlu1 %652 }
 0x25e   : > { %1314 = vpow2.f32 %v661_v61  ;;  %v658_v0 = vsub.f32 %v641_v45, %v650_v62  ;;  %v659_v1 = vsub.f32 %v642_v49, %v653_v63  ;;  %v1343_v45 = vmov 6  }
 0x25f   : > { %v1344_v49 = vmov 7   ;;  %v1577_v63 = vadd.f32 %v1525_v25, %v1538_v38 }
 0x260   : > { %v663_v2 = vmul.f32 1.442695, %v658_v0  ;;  %v665_v3 = vmul.f32 1.442695, %v659_v1 }
 0x261   : > { %v656_v4 = vpop.xlane.xlu1 %655 }
 0x262   : > { %1316 = vpow2.f32 %v663_v2  ;;  %v660_v5 = vsub.f32 %v643_v50, %v656_v4  ;;  %v1345_v50 = vmov 4  }
 0x263   : > { %1318 = vpow2.f32 %v665_v3 }
 0x264   : > { %v667_v6 = vmul.f32 1.442695, %v660_v5 }
 0x266   : > { %1320 = vpow2.f32 %v667_v6 }
 0x268   : > { %v1315_v7 = vpop.eup %1314 }
 0x269   : > { %v669_v8 = vsel %vm644_vm1, %v1315_v7, 0.0 }
 0x26a   : > { %670 = vadd.xlane.f32.xlu0 %v669_v8 }
 0x26c   : > { %v1317_v9 = vpop.eup %1316 }
 0x26d   : > { %v1508_v10 = vpop.eup %1318  ;;  %v672_v11 = vsel %vm644_vm1, %v1317_v9, 0.0 }
 0x26e   : > { %673 = vadd.xlane.f32.xlu1 %v672_v11  ;;  %v675_v12 = vsel %vm644_vm1, %v1508_v10, 0.0 }
 0x26f   : > { %676 = vadd.xlane.f32.xlu0 %v675_v12 }
 0x270   : > { %v1321_v13 = vpop.eup %1320 }
 0x271   : > { %v678_v14 = vsel %vm644_vm1, %v1321_v13, 0.0 }
 0x272   : > { %679 = vadd.xlane.f32.xlu1 %v678_v14 }
 0x2f7   : > { %v671_v20 = vpop.xlane.xlu0 %670 }
 0x2fb   : > { %v674_v19 = vpop.xlane.xlu1 %673 }
 0x2fc   : > { %1322 = vrcp.f32 %v674_v19  ;;  %v677_v33 = vpop.xlane.xlu0 %676 }
 0x2fd   : > { %1324 = vrcp.f32 %v671_v20 }
 0x2ff   : > { %v680_v22 = vpop.xlane.xlu1 %679 }
 0x300   : > { %1326 = vrcp.f32 %v680_v22 }
 0x301   : > { %1328 = vrcp.f32 %v677_v33 }
 0x306   : > { %v1323_v21 = vpop.eup %1322 }
 0x307   : > { %v1521_v24 = vmul.f32 %v1323_v21, %v1317_v9  ;;  %v1325_v29 = vpop.eup %1324 }
 0x308   : > { %v685_v34 = vmul.f32 %v1325_v29, %v1315_v7 }
 0x309   : > { %855 = vperm.xlu0 %1280, %v1521_v24   ;;  %793 = vperm.xlu1 %1278, %v1521_v24  }
 0x30a   : > { %v1327_v37 = vpop.eup %1326 }
 0x30b   : > { %v688_v44 = vmul.f32 %v1327_v37, %v1321_v13  ;;  %v1329_v47 = vpop.eup %1328 }
 0x30c   : > { %v687_v48 = vmul.f32 %v1329_v47, %v1508_v10  ;;  %v1588_v10 = vadd.f32 %v1517_v17, %v1538_v38  ;;  %v782_v17 = vadd.f32 %v1546_v43, %v1535_v36 }
 0x30d   : > { %1282 = vset.pattern.permute.xlu0 %v1340_v27  ;;  %1279 = vset.pattern.permute.xlu1 %v1341_v28 }
 0x30e   : > { %959 = vperm.xlu0 %1282, %v1521_v24   ;;  %815 = vperm.xlu1 %1279, %v1521_v24  }
 0x312   : > { %1284 = vset.pattern.permute.xlu0 %v1338_v57  ;;  %1281 = vset.pattern.permute.xlu1 %v1342_v35 }
 0x313   : > { %788 = vperm.xlu0 %1284, %v685_v34   ;;  %895 = vperm.xlu1 %1281, %v1521_v24  }
 0x317   : > { %1293 = vset.pattern.permute.xlu0 %v1339_v15  ;;  %1283 = vset.pattern.permute.xlu1 %v1343_v45 }
 0x318   : > { %999 = vperm.xlu1 %1283, %v1521_v24   ;;  %863 = vperm.xlu0 %1293, %v688_v44  }
 0x31c   : > { %1285 = vset.pattern.permute.xlu1 %v1341_v28  ;;  %1295 = vset.pattern.permute.xlu0 %v1340_v27 }
 0x31d   : > { %811 = vperm.xlu1 %1285, %v685_v34   ;;  %967 = vperm.xlu0 %1295, %v688_v44  }
 0x321   : > { %1286 = vset.pattern.permute.xlu1 %v1339_v15  ;;  %1300 = vset.pattern.permute.xlu0 %v1342_v35 }
 0x322   : > { %851 = vperm.xlu1 %1286, %v685_v34   ;;  %899 = vperm.xlu0 %1300, %v687_v48  }
 0x326   : > { %1287 = vset.pattern.permute.xlu1 %v1342_v35  ;;  %1302 = vset.pattern.permute.xlu0 %v1343_v45 }
 0x327   : > { %891 = vperm.xlu1 %1287, %v685_v34   ;;  %1003 = vperm.xlu0 %1302, %v687_v48  }
 0x32b   : > { %1288 = vset.pattern.permute.xlu1 %v1340_v27  ;;  %1303 = vset.pattern.permute.xlu0 %v1344_v49 }
 0x32c   : > { %955 = vperm.xlu1 %1288, %v685_v34   ;;  %1039 = vperm.xlu0 %1303, %v1521_v24  }
 0x330   : > { %1289 = vset.pattern.permute.xlu1 %v1343_v45  ;;  %1305 = vset.pattern.permute.xlu0 %v1345_v50 }
 0x331   : > { %995 = vperm.xlu1 %1289, %v685_v34   ;;  %931 = vperm.xlu0 %1305, %v685_v34  }
 0x335   : > { %1290 = vset.pattern.permute.xlu1 %v1344_v49  ;;  %943 = vperm.xlu0 %1305, %v688_v44  }
 0x336   : > { %1035 = vperm.xlu1 %1290, %v685_v34  }
 0x339   : > { %1307 = vset.pattern.permute.xlu0 %v1344_v49 }
 0x33a   : > { %1291 = vset.pattern.permute.xlu1 %v1338_v57 }
 0x33b   : > { %803 = vperm.xlu1 %1291, %v688_v44  }
 0x33f   : > { %1292 = vset.pattern.permute.xlu1 %v1341_v28 }
 0x340   : > { %823 = vperm.xlu1 %1292, %v688_v44  }
 0x344   : > { %1294 = vset.pattern.permute.xlu1 %v1342_v35 }
 0x345   : > { %903 = vperm.xlu1 %1294, %v688_v44  }
 0x349   : > { %1296 = vset.pattern.permute.xlu1 %v1343_v45 }
 0x34a   : > { %1007 = vperm.xlu1 %1296, %v688_v44  }
 0x34e   : > { %1297 = vset.pattern.permute.xlu1 %v1338_v57 }
 0x34f   : > { %798 = vperm.xlu1 %1297, %v687_v48  }
 0x353   : > { %1298 = vset.pattern.permute.xlu1 %v1341_v28 }
 0x354   : > { %819 = vperm.xlu1 %1298, %v687_v48  }
 0x358   : > { %1299 = vset.pattern.permute.xlu1 %v1339_v15 }
 0x359   : > { %859 = vperm.xlu1 %1299, %v687_v48  }
 0x35d   : > { %1301 = vset.pattern.permute.xlu1 %v1340_v27  ;;  %v1604_v27 = vadd.f32 %v1550_v46, %v1538_v38 }
 0x35e   : > { %963 = vperm.xlu1 %1301, %v687_v48  }
 0x362   : > { %1304 = vset.pattern.permute.xlu1 %v1344_v49 }
 0x363   : > { %1043 = vperm.xlu1 %1304, %v687_v48  }
 0x367   : > { %1047 = vperm.xlu1 %1304, %v688_v44  }
 0x36b   : > { %1306 = vset.pattern.permute.xlu1 %v1345_v50 }
 0x36c   : > { %935 = vperm.xlu1 %1306, %v1521_v24  }
 0x370   : > { %939 = vperm.xlu1 %1306, %v687_v48  }
 0x388   : > { %v856_v52 = vpop.permute.xlu0 %855  ;;  %v794_v53 = vpop.permute.xlu1 %793 }
 0x389   : > { %v1567_v54 = vmul.f32 %v794_v53, %v772_v51  ;;  %v867_v59 = vmul.f32 %v856_v52, %v772_v51 }
 0x38d   : > { %v960_v55 = vpop.permute.xlu0 %959  ;;  %v816_v56 = vpop.permute.xlu1 %815 }
 0x38e   : > { %v827_v57 = vmul.f32 %v816_v56, %v772_v51  ;;  %v971_v2 = vmul.f32 %v960_v55, %v1577_v63 }
 0x390   : > { %836 = vrot.lane.b32.xlu0 %v827_v57, %s1346_s10 }
 0x392   : > { %v789_v60 = vpop.permute.xlu0 %788  ;;  %v896_v61 = vpop.permute.xlu1 %895 }
 0x393   : > { %v1572_v62 = vmul.f32 %v789_v60, %v768_v58  ;;  %v907_v0 = vmul.f32 %v896_v61, %v772_v51 }
 0x394   : > { %876 = vrot.lane.b32.xlu0 %v867_v59, %s1347_s11 }
 0x397   : > { %v1000_v1 = vpop.permute.xlu1 %999  ;;  %v864_v13 = vpop.permute.xlu0 %863 }
 0x398   : > { %916 = vrot.lane.b32.xlu0 %v907_v0, %s1348_s12  ;;  %v1011_v5 = vmul.f32 %v1000_v1, %v1577_v63  ;;  %v869_v26 = vmul.f32 %v864_v13, %v782_v17 }
 0x39c   : > { %980 = vrot.lane.b32.xlu0 %v971_v2, %s1346_s10  ;;  %v812_v3 = vpop.permute.xlu1 %811  ;;  %v968_v16 = vpop.permute.xlu0 %967 }
 0x39d   : > { %v826_v4 = vmul.f32 %v812_v3, %v768_v58  ;;  %v973_v31 = vmul.f32 %v968_v16, %v1604_v27 }
 0x39f   : > { %834 = vrot.lane.b32.xlu1 %v826_v4, %s1346_s10 }
 0x3a0   : > { %1020 = vrot.lane.b32.xlu0 %v1011_v5, %s1347_s11 }
 0x3a1   : > { %v852_v6 = vpop.permute.xlu1 %851  ;;  %v900_v20 = vpop.permute.xlu0 %899 }
 0x3a2   : > { %v866_v7 = vmul.f32 %v852_v6, %v768_v58  ;;  %v908_v43 = vmul.f32 %v900_v20, %v1541_v40 }
 0x3a4   : > { %874 = vrot.lane.b32.xlu0 %v866_v7, %s1347_s11 }
 0x3a6   : > { %v892_v8 = vpop.permute.xlu1 %891  ;;  %v1004_v24 = vpop.permute.xlu0 %1003 }
 0x3a7   : > { %v906_v9 = vmul.f32 %v892_v8, %v768_v58  ;;  %v1012_v47 = vmul.f32 %v1004_v24, %v1544_v42 }
 0x3a9   : > { %914 = vrot.lane.b32.xlu0 %v906_v9, %s1348_s12 }
 0x3ab   : > { %v956_v11 = vpop.permute.xlu1 %955  ;;  %v1040_v30 = vpop.permute.xlu0 %1039 }
 0x3ac   : > { %v970_v12 = vmul.f32 %v956_v11, %v1588_v10  ;;  %v1051_v32 = vmul.f32 %v1040_v30, %v1577_v63 }
 0x3ae   : > { %978 = vrot.lane.b32.xlu1 %v970_v12, %s1346_s10 }
 0x3b0   : > { %v996_v14 = vpop.permute.xlu1 %995 }
 0x3b1   : > { %v1010_v15 = vmul.f32 %v996_v14, %v1588_v10 }
 0x3b3   : > { %1018 = vrot.lane.b32.xlu0 %v1010_v15, %s1347_s11 }
 0x3b5   : > { %v1036_v18 = vpop.permute.xlu1 %1035 }
 0x3b6   : > { %v1050_v19 = vmul.f32 %v1036_v18, %v1588_v10 }
 0x3b8   : > { %1058 = vrot.lane.b32.xlu0 %v1050_v19, %s1348_s12 }
 0x3ba   : > { %v804_v21 = vpop.permute.xlu1 %803 }
 0x3bb   : > { %v1599_v22 = vmul.f32 %v804_v21, %v782_v17 }
 0x3bf   : > { %v824_v23 = vpop.permute.xlu1 %823 }
 0x3c0   : > { %v829_v25 = vmul.f32 %v824_v23, %v782_v17 }
 0x3c2   : > { %840 = vrot.lane.b32.xlu1 %v829_v25, %s1346_s10 }
 0x3c4   : > { %v904_v28 = vpop.permute.xlu1 %903 }
 0x3c5   : > { %v909_v29 = vmul.f32 %v904_v28, %v782_v17 }
 0x3c6   : > { %880 = vrot.lane.b32.xlu1 %v869_v26, %s1347_s11 }
 0x3c7   : > { %920 = vrot.lane.b32.xlu0 %v909_v29, %s1348_s12 }
 0x3c9   : > { %v1008_v33 = vpop.permute.xlu1 %1007 }
 0x3ca   : > { %984 = vrot.lane.b32.xlu1 %v973_v31, %s1346_s10  ;;  %v1013_v34 = vmul.f32 %v1008_v33, %v1604_v27 }
 0x3cb   : > { %1060 = vrot.lane.b32.xlu0 %v1051_v32, %s1348_s12 }
 0x3ce   : > { %1024 = vrot.lane.b32.xlu1 %v1013_v34, %s1347_s11  ;;  %v799_v35 = vpop.permute.xlu1 %798 }
 0x3cf   : > { %v1615_v36 = vmul.f32 %v799_v35, %v1541_v40 }
 0x3d3   : > { %v820_v37 = vpop.permute.xlu1 %819 }
 0x3d4   : > { %v828_v38 = vmul.f32 %v820_v37, %v1541_v40 }
 0x3d6   : > { %838 = vrot.lane.b32.xlu1 %v828_v38, %s1346_s10 }
 0x3d8   : > { %v860_v39 = vpop.permute.xlu1 %859 }
 0x3d9   : > { %v868_v41 = vmul.f32 %v860_v39, %v1541_v40  ;;  %v932_v40 = vpop.permute.xlu0 %931 }
 0x3da   : > { %v946_v3 = vmul.f32 %v932_v40, %v1588_v10 }
 0x3db   : > { %878 = vrot.lane.b32.xlu1 %v868_v41, %s1347_s11 }
 0x3dd   : > { %v964_v44 = vpop.permute.xlu1 %963  ;;  %v944_v51 = vpop.permute.xlu0 %943 }
 0x3de   : > { %v972_v45 = vmul.f32 %v964_v44, %v1544_v42  ;;  %v949_v34 = vmul.f32 %v944_v51, %v1604_v27 }
 0x3df   : > { %918 = vrot.lane.b32.xlu1 %v908_v43, %s1348_s12 }
 0x3e2   : > { %v1044_v46 = vpop.permute.xlu1 %1043 }
 0x3e3   : > { %982 = vrot.lane.b32.xlu1 %v972_v45, %s1346_s10  ;;  %v1052_v50 = vmul.f32 %v1044_v46, %v1544_v42 }
 0x3e6   : > { %v1048_v48 = vpop.permute.xlu1 %1047 }
 0x3e7   : > { %v1053_v49 = vmul.f32 %v1048_v48, %v1604_v27  ;;  %1022 = vrot.lane.b32.xlu1 %v1012_v47, %s1347_s11 }
 0x3e9   : > { %1064 = vrot.lane.b32.xlu0 %v1053_v49, %s1348_s12 }
 0x3eb   : > { %1062 = vrot.lane.b32.xlu1 %v1052_v50, %s1348_s12  ;;  %v936_v56 = vpop.permute.xlu1 %935 }
 0x3ec   : > { %v947_v14 = vmul.f32 %v936_v56, %v1577_v63 }
 0x3ef   : > { %v940_v58 = vpop.permute.xlu1 %939 }
 0x3f0   : > { %v948_v35 = vmul.f32 %v940_v58, %v1544_v42 }
 0x402   : > { %v837_v52 = vpop.permute.xlu0 %836 }
 0x403   : > { %v847_v10 = vadd.f32 %v837_v52, %v1567_v54 }
 0x406   : > { %v877_v53 = vpop.permute.xlu0 %876 }
 0x407   : > { %v887_v12 = vadd.f32 %v877_v53, %v847_v10 }
 0x40a   : > { %v917_v55 = vpop.permute.xlu0 %916 }
 0x40b   : > { %v927_v13 = vadd.f32 %v917_v55, %v887_v12 }
 0x40d   : > { %v951_v16 = vadd.f32 %v947_v14, %v927_v13 }
 0x40e   : > { %v981_v57 = vpop.permute.xlu0 %980 }
 0x40f   : > { %v991_v17 = vadd.f32 %v981_v57, %v951_v16 }
 0x411   : > { %v835_v60 = vpop.permute.xlu1 %834 }
 0x412   : > { %v1021_v59 = vpop.permute.xlu0 %1020  ;;  %v846_v0 = vadd.f32 %v835_v60, %v1572_v62 }
 0x413   : > { %v1031_v20 = vadd.f32 %v1021_v59, %v991_v17 }
 0x416   : > { %v875_v61 = vpop.permute.xlu0 %874 }
 0x417   : > { %v886_v1 = vadd.f32 %v875_v61, %v846_v0 }
 0x41b   : > { %v915_v2 = vpop.permute.xlu0 %914 }
 0x41c   : > { %v926_v4 = vadd.f32 %v915_v2, %v886_v1 }
 0x41e   : > { %v950_v5 = vadd.f32 %v946_v3, %v926_v4 }
 0x420   : > { %v979_v6 = vpop.permute.xlu1 %978 }
 0x421   : > { %v990_v8 = vadd.f32 %v979_v6, %v950_v5 }
 0x425   : > { %v1019_v7 = vpop.permute.xlu0 %1018 }
 0x426   : > { %v1030_v9 = vadd.f32 %v1019_v7, %v990_v8 }
 0x42a   : > { %v1059_v11 = vpop.permute.xlu0 %1058 }
 0x42b   : > { %v1070_v62 = vadd.f32 %v1059_v11, %v1030_v9 }
 0x42d   : > { %1074 = vst.msk [vmem:[%s1638_s16] sm:$0xff] %vm325_vm0, %v1070_v62 }
 0x434   : > { %v841_v15 = vpop.permute.xlu1 %840 }
 0x435   : > { %v849_v28 = vadd.f32 %v841_v15, %v1599_v22 }
 0x438   : > { %v881_v18 = vpop.permute.xlu1 %880 }
 0x439   : > { %v921_v19 = vpop.permute.xlu0 %920  ;;  %v889_v54 = vadd.f32 %v881_v18, %v849_v28 }
 0x43b   : > { %v929_v31 = vadd.f32 %v921_v19, %v889_v54 }
 0x43c   : > { %v985_v23 = vpop.permute.xlu1 %984 }
 0x43d   : > { %v1061_v21 = vpop.permute.xlu0 %1060  ;;  %v953_v37 = vadd.f32 %v949_v34, %v929_v31 }
 0x43e   : > { %v1071_v24 = vadd.f32 %v1061_v21, %v1031_v20 }
 0x43f   : > { %v993_v41 = vadd.f32 %v985_v23, %v953_v37 }
 0x440   : > { %1075 = vst.msk [vmem:[%s1638_s16 + $0x8] sm:$0xff] %vm325_vm0, %v1071_v24  ;;  %v1025_v25 = vpop.permute.xlu1 %1024 }
 0x441   : > { %v1033_v46 = vadd.f32 %v1025_v25, %v993_v41 }
 0x448   : > { %v839_v26 = vpop.permute.xlu1 %838 }
 0x449   : > { %v848_v30 = vadd.f32 %v839_v26, %v1615_v36 }
 0x44d   : > { %v879_v29 = vpop.permute.xlu1 %878 }
 0x44e   : > { %v888_v63 = vadd.f32 %v879_v29, %v848_v30 }
 0x451   : > { %v919_v32 = vpop.permute.xlu1 %918 }
 0x452   : > { %v928_v33 = vadd.f32 %v919_v32, %v888_v63 }
 0x454   : > { %v952_v39 = vadd.f32 %v948_v35, %v928_v33 }
 0x455   : > { %v983_v38 = vpop.permute.xlu1 %982 }
 0x456   : > { %v992_v22 = vadd.f32 %v983_v38, %v952_v39 }
 0x459   : > { %v1023_v43 = vpop.permute.xlu1 %1022 }
 0x45a   : > { %v1032_v44 = vadd.f32 %v1023_v43, %v992_v22 }
 0x45b   : > { %v1065_v45 = vpop.permute.xlu0 %1064 }
 0x45c   : > { %v1073_v48 = vadd.f32 %v1065_v45, %v1033_v46 }
 0x45d   : > { %v1063_v36 = vpop.permute.xlu1 %1062 }
 0x45e   : > { %v1072_v47 = vadd.f32 %v1063_v36, %v1032_v44  ;;  %1077 = vst.msk [vmem:[%s1638_s16 + $0x18] sm:$0xff] %vm325_vm0, %v1073_v48 }
 0x460   : > { %1076 = vst.msk [vmem:[%s1638_s16 + $0x10] sm:$0xff] %vm325_vm0, %v1072_v47 }
 0x461 PF: > { %s18_s27 = sadd.s32 1, %s1336_s27  }
 0x462   : > { %p15_p4 = scmp.ge.s32.totalorder %s18_s27, 4  }
 0x464   :  { %17 = sbr.rel (!%p15_p4) target bundleno = 1 (0x1), region = 82 }

</bundles_post_ra>
